<compile_context>
chip_gen: v7x
topology: tpu7x:2x2x1
jax: 0.10.0
libtpu: 0.0.40
codegen_flags: <defaults>
</compile_context>

<pallas_src>
from typing import Any, List

import jax
import jax.numpy as jnp
import numpy as np
from jax.experimental import pallas as pl
from jax.experimental.pallas import tpu as pltpu


def _round_up(a: int, m: int) -> int:
    return ((a + m - 1) // m) * m


# ----------------------------------------------------------------------------
# Fused Pallas kernels (predictor + class gather + sigmoid / BCE)
# ----------------------------------------------------------------------------

def _fused_sigmoid_kernel(x_ref, wg_ref, bg_ref, o_ref):
    # x_ref : (TB, C, HW)  features (NCHW with HW flattened, no transpose)
    # wg_ref: (TB, C, 1)   per-ROI gathered predictor weight column
    # bg_ref: (TB, 1)      per-ROI gathered predictor bias
    # o_ref : (TB, HW)     sigmoid(gathered class logits)   (lane-dense)
    tb = x_ref.shape[0]
    rows = []
    for t in range(tb):  # static unroll over the ROI tile
        # (C, HW) * (C, 1) summed over C -> (1, HW): per-ROI class-column logits
        rows.append(jnp.sum(x_ref[t] * wg_ref[t], axis=0, keepdims=True))
    logits = jnp.concatenate(rows, axis=0) + bg_ref[...]
    o_ref[...] = jax.nn.sigmoid(logits)


def fused_mask_inference(x, w, b, classes, *, roi_tile=8):
    """sigmoid(conv1x1(x)[arange(N), classes])[:, None] -> (N, 1, H, W)."""
    N, C, H, W = x.shape
    HW = H * W
    tb = max(8, _round_up(min(roi_tile, N), 8))
    n_pad = _round_up(N, tb)

    classes_p = jnp.pad(classes.astype(jnp.int32), (0, n_pad - N))
    xf = jnp.pad(x.reshape(N, C, HW), ((0, n_pad - N), (0, 0), (0, 0)))
    wg = jnp.take(w, classes_p, axis=1).T[:, :, None]     # (n_pad, C, 1)
    bg = jnp.take(b[0], classes_p)[:, None]               # (n_pad, 1)

    out = pl.pallas_call(
        _fused_sigmoid_kernel,
        out_shape=jax.ShapeDtypeStruct((n_pad, HW), jnp.float32),
        grid=(n_pad // tb,),
        in_specs=[
            pl.BlockSpec((tb, C, HW), lambda i: (i, 0, 0)),
            pl.BlockSpec((tb, C, 1), lambda i: (i, 0, 0)),
            pl.BlockSpec((tb, 1), lambda i: (i, 0)),
        ],
        out_specs=pl.BlockSpec((tb, HW), lambda i: (i, 0)),
        compiler_params=pltpu.CompilerParams(
            dimension_semantics=("parallel",)),
    )(xf, wg, bg)
    return out[:N].reshape(N, 1, H, W)


def fused_mask_loss(x, w, b, classes, gt_masks, *, roi_tile=8):
    """mean BCE-with-logits between the gathered-class predictor output and gt."""
    N, C, H, W = x.shape
    HW = H * W
    tb = max(8, _round_up(min(roi_tile, N), 8))
    n_pad = _round_up(N, tb)

    classes_p = jnp.pad(classes.astype(jnp.int32), (0, n_pad - N))
    xf = jnp.pad(x.reshape(N, C, HW), ((0, n_pad - N), (0, 0), (0, 0)))
    gtf = jnp.pad(gt_masks.astype(jnp.float32).reshape(N, HW),
                  ((0, n_pad - N), (0, 0)))
    wg = jnp.take(w, classes_p, axis=1).T[:, :, None]     # (n_pad, C, 1)
    bg = jnp.take(b[0], classes_p)[:, None]               # (n_pad, 1)

    def kernel(x_ref, wg_ref, bg_ref, gt_ref, o_ref, acc_ref):
        i = pl.program_id(0)

        @pl.when(i == 0)
        def _():
            acc_ref[...] = jnp.zeros_like(acc_ref)

        rows = []
        for t in range(tb):  # static unroll over the ROI tile
            rows.append(jnp.sum(x_ref[t] * wg_ref[t], axis=0, keepdims=True))
        logits = jnp.concatenate(rows, axis=0) + bg_ref[...]     # (TB, HW)
        z = gt_ref[...]
        # numerically-stable binary_cross_entropy_with_logits
        bce = (jnp.maximum(logits, 0.0) - logits * z
               + jnp.log1p(jnp.exp(-jnp.abs(logits))))
        # zero-out rows that are padding (N padded up to a multiple of tb)
        row_idx = i * tb + jax.lax.broadcasted_iota(jnp.int32, bce.shape, 0)
        bce = jnp.where(row_idx < N, bce, 0.0)
        acc_ref[...] = acc_ref[...] + jnp.sum(bce)

        @pl.when(i == pl.num_programs(0) - 1)
        def _():
            o_ref[...] = acc_ref[...]

    total = pl.pallas_call(
        kernel,
        out_shape=jax.ShapeDtypeStruct((1, 1), jnp.float32),
        grid=(n_pad // tb,),
        in_specs=[
            pl.BlockSpec((tb, C, HW), lambda i: (i, 0, 0)),
            pl.BlockSpec((tb, C, 1), lambda i: (i, 0, 0)),
            pl.BlockSpec((tb, 1), lambda i: (i, 0)),
            pl.BlockSpec((tb, HW), lambda i: (i, 0)),
        ],
        out_specs=pl.BlockSpec((1, 1), lambda i: (0, 0)),
        scratch_shapes=[pltpu.VMEM((1, 1), jnp.float32)],
        compiler_params=pltpu.CompilerParams(
            dimension_semantics=("arbitrary",)),
    )(xf, wg, bg, gtf)
    return total[0, 0] / jnp.float32(N * H * W)


# ----------------------------------------------------------------------------
# Module-level glue (mirrors the PyTorch reference semantics)
# ----------------------------------------------------------------------------

class Instances:
    """Minimal stand-in for detectron2 Instances."""

    def __init__(self, pred_classes, gt_classes, gt_masks):
        self.pred_classes = pred_classes    # (n,) int32
        self.gt_classes = gt_classes        # (n,) int32
        self.gt_masks = gt_masks            # (n, H, W) float32 in [0, 1]
        self.pred_masks = None

    def __len__(self):
        return int(self.pred_classes.shape[0])


def mask_rcnn_inference(features, w, b, pred_instances: List[Instances]):
    """Predictor + class gather + sigmoid, fused; fills instances.pred_masks."""
    cls_agnostic_mask = w.shape[1] == 1
    num_masks = features.shape[0]
    if cls_agnostic_mask:
        classes = jnp.zeros((num_masks,), jnp.int32)
    else:
        classes = jnp.concatenate(
            [i.pred_classes for i in pred_instances]).astype(jnp.int32)
    mask_probs_pred = fused_mask_inference(features, w, b, classes)
    num_boxes_per_image = [len(i) for i in pred_instances]
    offsets = np.cumsum([0] + num_boxes_per_image)
    for k, instances in enumerate(pred_instances):
        instances.pred_masks = mask_probs_pred[offsets[k]:offsets[k + 1]]


def mask_rcnn_loss(features, w, b, instances: List[Instances]):
    """Predictor + class gather + mean BCE-with-logits, fused."""
    cls_agnostic_mask = w.shape[1] == 1
    total_num_masks = features.shape[0]
    assert features.shape[2] == features.shape[3], \
        "Mask prediction must be square!"
    gt_classes, gt_masks = [], []
    for inst in instances:
        if len(inst) == 0:
            continue
        if not cls_agnostic_mask:
            gt_classes.append(inst.gt_classes.astype(jnp.int32))
        # TODO(synk): GT masks' crop_and_resize (ROIAlign rasterization) lives
        # outside this head; gt_masks are assumed pre-rasterized to mask_side_len.
        gt_masks.append(inst.gt_masks)
    if len(gt_masks) == 0:
        return jnp.sum(features) * 0.0
    gt_masks = jnp.concatenate(gt_masks, axis=0).astype(jnp.float32)
    if cls_agnostic_mask:
        classes = jnp.zeros((total_num_masks,), jnp.int32)
    else:
        classes = jnp.concatenate(gt_classes, axis=0)
    # TODO(synk): mask_accuracy / false_positive / false_negative are host-side
    # .item() logging in the reference; omitted here (loss value unaffected).
    return fused_mask_loss(features, w, b, classes, gt_masks)


class BaseMaskRCNNHead:
    """JAX/Pallas port of the PyTorch BaseMaskRCNNHead forward pass.

    The 1x1-conv mask predictor (layers()) is fused with the class gather and
    the sigmoid / BCE inside the Pallas kernels, so only each ROI's own class
    column is ever computed and the (N, K, H, W) logits never touch HBM.
    """

    def __init__(self, *, in_channels, num_classes, vis_period=0, key=None):
        self.vis_period = vis_period
        self.training = False
        key = key if key is not None else jax.random.PRNGKey(0)
        kw, kb = jax.random.split(key)
        # deterministic synthetic predictor parameters (1x1 conv: Cin -> K)
        self.w = (jax.random.normal(kw, (in_channels, num_classes), jnp.float32)
                  * 0.1)
        self.b = jax.random.normal(kb, (1, num_classes), jnp.float32) * 0.01

    def layers(self, x):
        # TODO(synk): abstract (NotImplementedError) in the PyTorch base class;
        # here the predictor is fused into the Pallas kernels (forward below),
        # so the standalone full-logits predictor is intentionally not built.
        raise NotImplementedError(
            "predictor is fused into the Pallas inference/loss kernels")

    def forward(self, x, instances: List[Instances]) -> Any:
        if self.training:
            return {"loss_mask": mask_rcnn_loss(x, self.w, self.b, instances)}
        else:
            mask_rcnn_inference(x, self.w, self.b, instances)
            return instances

    __call__ = forward


# ----------------------------------------------------------------------------
# Demo / self-check
# ----------------------------------------------------------------------------

if __name__ == "__main__":
    key = jax.random.PRNGKey(0)
    k_x, k_c1, k_c2, k_g1, k_g2, k_head = jax.random.split(key, 6)

    N, C_IN, K, H, W = 4, 8, 8, 16, 16        # 4 ROIs (2 per image), 8 classes
    x = jax.random.normal(k_x, (N, C_IN, H, W), jnp.float32)

    cls_a = jax.random.randint(k_c1, (2,), 0, K, jnp.int32)
    cls_b = jax.random.randint(k_c2, (2,), 0, K, jnp.int32)
    gm_a = (jax.random.uniform(k_g1, (2, H, W)) > 0.5).astype(jnp.float32)
    gm_b = (jax.random.uniform(k_g2, (2, H, W)) > 0.5).astype(jnp.float32)
    instances = [
        Instances(cls_a, cls_a, gm_a),
        Instances(cls_b, cls_b, gm_b),
    ]

    head = BaseMaskRCNNHead(in_channels=C_IN, num_classes=K, key=k_head)

    # --- inference path ---
    head.training = False
    out_instances = head(x, instances)
    pred_masks = [jax.block_until_ready(i.pred_masks) for i in out_instances]

    # --- training path ---
    head.training = True
    loss_dict = head(x, instances)
    loss = jax.block_until_ready(loss_dict["loss_mask"])

    # --- pure-JAX reference check (full predictor, then gather: same math) ---
    classes_all = jnp.concatenate([cls_a, cls_b]).astype(jnp.int32)
    w_g = head.w[:, classes_all].T                              # (N, C)
    b_g = head.b[0, classes_all]                                # (N,)
    gathered = jnp.sum(x * w_g[:, :, None, None], axis=1) \
        + b_g[:, None, None]                                    # (N, H, W)
    probs_ref = jax.nn.sigmoid(gathered)[:, None]               # (N, 1, H, W)
    gts = jnp.concatenate([gm_a, gm_b], axis=0)
    bce_ref = jnp.mean(
        jnp.maximum(gathered, 0.0) - gathered * gts
        + jnp.log1p(jnp.exp(-jnp.abs(gathered))))

    probs_got = jnp.concatenate(pred_masks, axis=0)
    assert np.allclose(np.asarray(probs_got), np.asarray(probs_ref),
                       rtol=1e-5, atol=1e-5)
    assert np.allclose(float(loss), float(bce_ref), rtol=1e-5, atol=1e-5)

    print("KERNEL_OK")
</pallas_src>

<mosaic_0001>
module attributes {stable_mosaic.version = 11 : i64} {
  func.func @_fused_sigmoid_kernel(%arg0: i32, %arg1: memref<8x8x256xf32, #tpu.memory_space<vmem>>, %arg2: memref<8x8x1xf32, #tpu.memory_space<vmem>>, %arg3: memref<8x1xf32, #tpu.memory_space<vmem>>, %arg4: memref<8x256xf32, #tpu.memory_space<vmem>>) attributes {dimension_semantics = [#tpu.dimension_semantics<parallel>], iteration_bounds = array<i64: 1>, scalar_prefetch = 0 : i64, scratch_operands = 0 : i64, tpu.core_type = #tpu.core_type<tc>, window_params = [{transform_indices = @transform_0, window_bounds = array<i64: 8, 8, 256>}, {transform_indices = @transform_1, window_bounds = array<i64: 8, 8, 1>}, {transform_indices = @transform_2, window_bounds = array<i64: 8, 1>}, {transform_indices = @transform_3, window_bounds = array<i64: 8, 256>}]} {
    %c0 = arith.constant 0 : index
    %c0_0 = arith.constant 0 : index
    %c0_1 = arith.constant 0 : index
    %0 = vector.load %arg1[%c0, %c0_0, %c0_1] : memref<8x8x256xf32, #tpu.memory_space<vmem>>, vector<1x8x256xf32>
    %1 = vector.shape_cast %0 : vector<1x8x256xf32> to vector<8x256xf32>
    %c0_2 = arith.constant 0 : index
    %c0_3 = arith.constant 0 : index
    %c0_4 = arith.constant 0 : index
    %2 = vector.load %arg2[%c0_2, %c0_3, %c0_4] : memref<8x8x1xf32, #tpu.memory_space<vmem>>, vector<1x8x1xf32>
    %3 = vector.shape_cast %2 : vector<1x8x1xf32> to vector<8x1xf32>
    %4 = vector.broadcast %3 : vector<8x1xf32> to vector<8x256xf32>
    %5 = arith.mulf %1, %4 : vector<8x256xf32>
    %cst = arith.constant dense<0.000000e+00> : vector<256xf32>
    %6 = vector.multi_reduction <add>, %5, %cst [0] : vector<8x256xf32> to vector<256xf32>
    %7 = vector.shape_cast %6 : vector<256xf32> to vector<1x256xf32>
    %c1 = arith.constant 1 : index
    %c0_5 = arith.constant 0 : index
    %c0_6 = arith.constant 0 : index
    %8 = vector.load %arg1[%c1, %c0_5, %c0_6] : memref<8x8x256xf32, #tpu.memory_space<vmem>>, vector<1x8x256xf32>
    %9 = vector.shape_cast %8 : vector<1x8x256xf32> to vector<8x256xf32>
    %c1_7 = arith.constant 1 : index
    %c0_8 = arith.constant 0 : index
    %c0_9 = arith.constant 0 : index
    %10 = vector.load %arg2[%c1_7, %c0_8, %c0_9] : memref<8x8x1xf32, #tpu.memory_space<vmem>>, vector<1x8x1xf32>
    %11 = vector.shape_cast %10 : vector<1x8x1xf32> to vector<8x1xf32>
    %12 = vector.broadcast %11 : vector<8x1xf32> to vector<8x256xf32>
    %13 = arith.mulf %9, %12 : vector<8x256xf32>
    %cst_10 = arith.constant dense<0.000000e+00> : vector<256xf32>
    %14 = vector.multi_reduction <add>, %13, %cst_10 [0] : vector<8x256xf32> to vector<256xf32>
    %15 = vector.shape_cast %14 : vector<256xf32> to vector<1x256xf32>
    %c2 = arith.constant 2 : index
    %c0_11 = arith.constant 0 : index
    %c0_12 = arith.constant 0 : index
    %16 = vector.load %arg1[%c2, %c0_11, %c0_12] : memref<8x8x256xf32, #tpu.memory_space<vmem>>, vector<1x8x256xf32>
    %17 = vector.shape_cast %16 : vector<1x8x256xf32> to vector<8x256xf32>
    %c2_13 = arith.constant 2 : index
    %c0_14 = arith.constant 0 : index
    %c0_15 = arith.constant 0 : index
    %18 = vector.load %arg2[%c2_13, %c0_14, %c0_15] : memref<8x8x1xf32, #tpu.memory_space<vmem>>, vector<1x8x1xf32>
    %19 = vector.shape_cast %18 : vector<1x8x1xf32> to vector<8x1xf32>
    %20 = vector.broadcast %19 : vector<8x1xf32> to vector<8x256xf32>
    %21 = arith.mulf %17, %20 : vector<8x256xf32>
    %cst_16 = arith.constant dense<0.000000e+00> : vector<256xf32>
    %22 = vector.multi_reduction <add>, %21, %cst_16 [0] : vector<8x256xf32> to vector<256xf32>
    %23 = vector.shape_cast %22 : vector<256xf32> to vector<1x256xf32>
    %c3 = arith.constant 3 : index
    %c0_17 = arith.constant 0 : index
    %c0_18 = arith.constant 0 : index
    %24 = vector.load %arg1[%c3, %c0_17, %c0_18] : memref<8x8x256xf32, #tpu.memory_space<vmem>>, vector<1x8x256xf32>
    %25 = vector.shape_cast %24 : vector<1x8x256xf32> to vector<8x256xf32>
    %c3_19 = arith.constant 3 : index
    %c0_20 = arith.constant 0 : index
    %c0_21 = arith.constant 0 : index
    %26 = vector.load %arg2[%c3_19, %c0_20, %c0_21] : memref<8x8x1xf32, #tpu.memory_space<vmem>>, vector<1x8x1xf32>
    %27 = vector.shape_cast %26 : vector<1x8x1xf32> to vector<8x1xf32>
    %28 = vector.broadcast %27 : vector<8x1xf32> to vector<8x256xf32>
    %29 = arith.mulf %25, %28 : vector<8x256xf32>
    %cst_22 = arith.constant dense<0.000000e+00> : vector<256xf32>
    %30 = vector.multi_reduction <add>, %29, %cst_22 [0] : vector<8x256xf32> to vector<256xf32>
    %31 = vector.shape_cast %30 : vector<256xf32> to vector<1x256xf32>
    %c4 = arith.constant 4 : index
    %c0_23 = arith.constant 0 : index
    %c0_24 = arith.constant 0 : index
    %32 = vector.load %arg1[%c4, %c0_23, %c0_24] : memref<8x8x256xf32, #tpu.memory_space<vmem>>, vector<1x8x256xf32>
    %33 = vector.shape_cast %32 : vector<1x8x256xf32> to vector<8x256xf32>
    %c4_25 = arith.constant 4 : index
    %c0_26 = arith.constant 0 : index
    %c0_27 = arith.constant 0 : index
    %34 = vector.load %arg2[%c4_25, %c0_26, %c0_27] : memref<8x8x1xf32, #tpu.memory_space<vmem>>, vector<1x8x1xf32>
    %35 = vector.shape_cast %34 : vector<1x8x1xf32> to vector<8x1xf32>
    %36 = vector.broadcast %35 : vector<8x1xf32> to vector<8x256xf32>
    %37 = arith.mulf %33, %36 : vector<8x256xf32>
    %cst_28 = arith.constant dense<0.000000e+00> : vector<256xf32>
    %38 = vector.multi_reduction <add>, %37, %cst_28 [0] : vector<8x256xf32> to vector<256xf32>
    %39 = vector.shape_cast %38 : vector<256xf32> to vector<1x256xf32>
    %c5 = arith.constant 5 : index
    %c0_29 = arith.constant 0 : index
    %c0_30 = arith.constant 0 : index
    %40 = vector.load %arg1[%c5, %c0_29, %c0_30] : memref<8x8x256xf32, #tpu.memory_space<vmem>>, vector<1x8x256xf32>
    %41 = vector.shape_cast %40 : vector<1x8x256xf32> to vector<8x256xf32>
    %c5_31 = arith.constant 5 : index
    %c0_32 = arith.constant 0 : index
    %c0_33 = arith.constant 0 : index
    %42 = vector.load %arg2[%c5_31, %c0_32, %c0_33] : memref<8x8x1xf32, #tpu.memory_space<vmem>>, vector<1x8x1xf32>
    %43 = vector.shape_cast %42 : vector<1x8x1xf32> to vector<8x1xf32>
    %44 = vector.broadcast %43 : vector<8x1xf32> to vector<8x256xf32>
    %45 = arith.mulf %41, %44 : vector<8x256xf32>
    %cst_34 = arith.constant dense<0.000000e+00> : vector<256xf32>
    %46 = vector.multi_reduction <add>, %45, %cst_34 [0] : vector<8x256xf32> to vector<256xf32>
    %47 = vector.shape_cast %46 : vector<256xf32> to vector<1x256xf32>
    %c6 = arith.constant 6 : index
    %c0_35 = arith.constant 0 : index
    %c0_36 = arith.constant 0 : index
    %48 = vector.load %arg1[%c6, %c0_35, %c0_36] : memref<8x8x256xf32, #tpu.memory_space<vmem>>, vector<1x8x256xf32>
    %49 = vector.shape_cast %48 : vector<1x8x256xf32> to vector<8x256xf32>
    %c6_37 = arith.constant 6 : index
    %c0_38 = arith.constant 0 : index
    %c0_39 = arith.constant 0 : index
    %50 = vector.load %arg2[%c6_37, %c0_38, %c0_39] : memref<8x8x1xf32, #tpu.memory_space<vmem>>, vector<1x8x1xf32>
    %51 = vector.shape_cast %50 : vector<1x8x1xf32> to vector<8x1xf32>
    %52 = vector.broadcast %51 : vector<8x1xf32> to vector<8x256xf32>
    %53 = arith.mulf %49, %52 : vector<8x256xf32>
    %cst_40 = arith.constant dense<0.000000e+00> : vector<256xf32>
    %54 = vector.multi_reduction <add>, %53, %cst_40 [0] : vector<8x256xf32> to vector<256xf32>
    %55 = vector.shape_cast %54 : vector<256xf32> to vector<1x256xf32>
    %c7 = arith.constant 7 : index
    %c0_41 = arith.constant 0 : index
    %c0_42 = arith.constant 0 : index
    %56 = vector.load %arg1[%c7, %c0_41, %c0_42] : memref<8x8x256xf32, #tpu.memory_space<vmem>>, vector<1x8x256xf32>
    %57 = vector.shape_cast %56 : vector<1x8x256xf32> to vector<8x256xf32>
    %c7_43 = arith.constant 7 : index
    %c0_44 = arith.constant 0 : index
    %c0_45 = arith.constant 0 : index
    %58 = vector.load %arg2[%c7_43, %c0_44, %c0_45] : memref<8x8x1xf32, #tpu.memory_space<vmem>>, vector<1x8x1xf32>
    %59 = vector.shape_cast %58 : vector<1x8x1xf32> to vector<8x1xf32>
    %60 = vector.broadcast %59 : vector<8x1xf32> to vector<8x256xf32>
    %61 = arith.mulf %57, %60 : vector<8x256xf32>
    %cst_46 = arith.constant dense<0.000000e+00> : vector<256xf32>
    %62 = vector.multi_reduction <add>, %61, %cst_46 [0] : vector<8x256xf32> to vector<256xf32>
    %63 = vector.shape_cast %62 : vector<256xf32> to vector<1x256xf32>
    %64 = tpu.concatenate %7, %15, %23, %31, %39, %47, %55, %63 in 0 : vector<1x256xf32>, vector<1x256xf32>, vector<1x256xf32>, vector<1x256xf32>, vector<1x256xf32>, vector<1x256xf32>, vector<1x256xf32>, vector<1x256xf32> -> vector<8x256xf32>
    %c0_47 = arith.constant 0 : index
    %c0_48 = arith.constant 0 : index
    %65 = vector.load %arg3[%c0_47, %c0_48] : memref<8x1xf32, #tpu.memory_space<vmem>>, vector<8x1xf32>
    %66 = vector.broadcast %65 : vector<8x1xf32> to vector<8x256xf32>
    %67 = arith.addf %64, %66 : vector<8x256xf32>
    %68 = arith.negf %67 : vector<8x256xf32>
    %69 = math.exp %68 : vector<8x256xf32>
    %cst_49 = arith.constant 1.000000e+00 : f32
    %70 = vector.broadcast %cst_49 : f32 to vector<8x256xf32>
    %71 = arith.addf %70, %69 : vector<8x256xf32>
    %72 = arith.divf %70, %71 : vector<8x256xf32>
    %c0_50 = arith.constant 0 : index
    %c0_51 = arith.constant 0 : index
    %73 = vector.load %arg4[%c0_50, %c0_51] : memref<8x256xf32, #tpu.memory_space<vmem>>, vector<8x256xf32>
    tpu.vector_store %arg4[%c0_50, %c0_51], %72 {strides = array<i32>} : memref<8x256xf32, #tpu.memory_space<vmem>>, vector<8x256xf32>,
    return
  }
  func.func @transform_0(%arg0: i32) -> (i32, i32, i32) {
    %c0_i32 = arith.constant 0 : i32
    %c0_i32_0 = arith.constant 0 : i32
    %c0_i32_1 = arith.constant 0 : i32
    return %arg0, %c0_i32, %c0_i32_0 : i32, i32, i32
  }
  func.func @transform_1(%arg0: i32) -> (i32, i32, i32) {
    %c0_i32 = arith.constant 0 : i32
    %c0_i32_0 = arith.constant 0 : i32
    %c0_i32_1 = arith.constant 0 : i32
    return %arg0, %c0_i32, %c0_i32_0 : i32, i32, i32
  }
  func.func @transform_2(%arg0: i32) -> (i32, i32) {
    %c0_i32 = arith.constant 0 : i32
    %c0_i32_0 = arith.constant 0 : i32
    return %arg0, %c0_i32 : i32, i32
  }
  func.func @transform_3(%arg0: i32) -> (i32, i32) {
    %c0_i32 = arith.constant 0 : i32
    %c0_i32_0 = arith.constant 0 : i32
    return %arg0, %c0_i32 : i32, i32
  }
}

</mosaic_0001>

<bundles_post_ra>
// kernel: tpu_custom_call.1
= control target key start
LH: loop header
LB: loop body
LE: loop exit
PB: predicated region body
PF: predicated region fallthrough
CT: control target
= control target key end

     0   :  { %8 = vsyncpa [#allocation3], 0  ;;  %s439_s0 = inlined_call_operand.hbm [shape: f32[8,8,256], index: 0, kind: input, shape index: {}]   ;;  %s440_s1 = inlined_call_operand.vmem [shape: f32[8,8,1], index: 1, kind: input, shape index: {}]   ;;  %s441_s2 = inlined_call_operand.vmem [shape: f32[8,1], index: 2, kind: input, shape index: {}]   ;;  %s442_s3 = inlined_call_operand.hbm [shape: f32[8,256], index: 3, kind: output, shape index: {}]  }
   0x1   :  { %9 = vsyncpa [#allocation4], 0  ;;  %s349_s12 = smov [#allocation2]   ;;  %s301_s16 = scalar_lea.hbm %s439_s0, 2048 }
   0x2   :  { %s15_s13 = sshll.u32 %s349_s12, 4  ;;  %p302_p0 = scmp.ne.s32.totalorder %s439_s0, %s301_s16  ;;  %s16_s13 = int_to_ptr.vmem [resolvable:$true] %s15_s13 }
   0x3   :  { %p305_p1 = scmp.lt.u32.totalorder %s301_s16, %s439_s0 }
   0x5   :  { %p307_p2 = pnand %p305_p1, %p302_p0 }
   0x7   :  { %310 = shalt.err (!%p307_p2)
}
   0x8   :  { %s311_s21 = scalar_lea.vmem %s16_s13, 2048  ;;  %p316_p4 = scmp.lt.s32.totalorder %s16_s13, %s16_s13 }
   0x9   :  { %p312_p3 = scmp.ne.s32.totalorder %s16_s13, %s311_s21  ;;  %p317_p5 = scmp.lt.s32.totalorder %s311_s21, %s311_s21 }
   0xb   :  { %p318_p6 = por %p317_p5, %p316_p4 }
   0xd   :  { %p319_p7 = pnand %p318_p6, %p312_p3 }
   0xf   :  { %322 = shalt.err (!%p319_p7)
}
  0x10   :  { %s350_s22 = smov 256   ;;  %s351_s23 = smov 16  }
  0x11   :  { %21 = dma.hbm_to_vmem [thread:$0]  %s439_s0, 2048, %s16_s13, [#allocation3], %s350_s22, %s350_s22, %s351_s23  }
  0x12   :  { %345 = dma.done.wait [#allocation3], 2048  }
  0x13   :  { %346 = vsyncadd [#allocation3], 4294965248  ;;  %v352_v0 = vmov 0   ;;  %v278_v1 = vld [vmem:[%s440_s1 + $0x10] sm:$0xff]  ;;  %v31_v2 = vld [vmem:[%s440_s1] sm:$0xff]  ;;  %vm219_vm0 = vcmask 1040384  }
  0x14   :  { %292 = vset.pattern.permute.xlu1 %v352_v0  ;;  %291 = vset.pattern.permute.xlu0 %v352_v0  ;;  %v279_v3 = vld [vmem:[%s440_s1 + $0x18] sm:$0xff]  ;;  %v277_v4 = vld [vmem:[%s440_s1 + $0x8] sm:$0xff]  ;;  %v280_v6 = vld [vmem:[%s440_s1 + $0x20] sm:$0xff]  ;;  %vm222_vm1 = vcmask 1041408   ;;  %vm225_vm2 = vcmask 1042432   ;;  %vm228_vm3 = vcmask 1043456  }
  0x15   :  { %82 = vperm.xlu1 %292, %v278_v1   ;;  %34 = vperm.xlu0 %291, %v31_v2   ;;  %v281_v5 = vld [vmem:[%s440_s1 + $0x28] sm:$0xff]  ;;  %v283_v7 = vld [vmem:[%s440_s1 + $0x38] sm:$0xff]  ;;  %v282_v8 = vld [vmem:[%s440_s1 + $0x30] sm:$0xff]  ;;  %vm231_vm4 = vcmask 1044480   ;;  %vm234_vm5 = vcmask 1045504   ;;  %vm237_vm6 = vcmask 1046528  }
  0x16   :  { %v240_v9 = vld [vmem:[%s441_s2] sm:$0xff]  ;;  %v77_v11 = vld [vmem:[#allocation2 + $0x28] sm:$0xff]  ;;  %v100_v20 = vld [vmem:[#allocation2 + $0x30] sm:$0xff]  ;;  %s353_s1 = smov [#allocation5]  }
  0x17   :  { %v76_v10 = vld [vmem:[#allocation2 + $0x20] sm:$0xff]  ;;  %v30_v13 = vld [vmem:[#allocation2 + $0x8] sm:$0xff]  ;;  %v101_v21 = vld [vmem:[#allocation2 + $0x38] sm:$0xff]  ;;  %s268_s2 = sshll.u32 %s353_s1, 4  ;;  %s269_s2 = int_to_ptr.vmem [resolvable:$true] %s268_s2 }
  0x18   :  { %v29_v12 = vld [vmem:[#allocation2] sm:$0xff]  ;;  %v52_v26 = vld [vmem:[#allocation2 + $0x10] sm:$0xff]  ;;  %v53_v27 = vld [vmem:[#allocation2 + $0x18] sm:$0xff]  ;;  %s323_s16 = scalar_lea.vmem %s269_s2, 256  ;;  %p328_p9 = scmp.lt.s32.totalorder %s269_s2, %s269_s2 }
  0x19   :  { %106 = vperm.xlu1 %292, %v279_v3   ;;  %58 = vperm.xlu0 %291, %v277_v4   ;;  %v148_v56 = vld [vmem:[#allocation2 + $0x50] sm:$0xff]  ;;  %v149_v57 = vld [vmem:[#allocation2 + $0x58] sm:$0xff]  ;;  %v124_v63 = vld [vmem:[#allocation2 + $0x40] sm:$0xff]  ;;  %p324_p8 = scmp.ne.s32.totalorder %s269_s2, %s323_s16  ;;  %p329_p10 = scmp.lt.s32.totalorder %s323_s16, %s323_s16 }
  0x1a   :  { %v125_v0 = vld [vmem:[#allocation2 + $0x48] sm:$0xff] }
  0x1b   :  { %p330_p11 = por %p329_p10, %p328_p9 }
  0x1d   :  { %154 = vperm.xlu1 %292, %v281_v5   ;;  %130 = vperm.xlu0 %291, %v280_v6   ;;  %p331_p12 = pnand %p330_p11, %p324_p8 }
  0x21   :  { %202 = vperm.xlu1 %292, %v283_v7   ;;  %178 = vperm.xlu0 %291, %v282_v8  }
  0x25   :  { %243 = vperm.xlu0 %291, %v240_v9  }
  0x94   :  { %v83_v14 = vpop.permute.xlu1 %82  ;;  %v35_v15 = vpop.permute.xlu0 %34 }
  0x95   :  { %v85_v16 = vmul.f32 %v83_v14, %v76_v10  ;;  %v86_v17 = vmul.f32 %v83_v14, %v77_v11  ;;  %v37_v18 = vmul.f32 %v35_v15, %v29_v12  ;;  %v38_v19 = vmul.f32 %v35_v15, %v30_v13 }
  0x97   :  { %v87_v22 = vrot.slane %v85_v16, 4  ;;  %v93_v23 = vrot.slane %v86_v17, 4  ;;  %v39_v24 = vrot.slane %v37_v18, 4  ;;  %v45_v25 = vrot.slane %v38_v19, 4 }
  0x98   :  { %v107_v28 = vpop.permute.xlu1 %106  ;;  %v59_v29 = vpop.permute.xlu0 %58 }
  0x99   :  { %v88_v30 = vadd.f32 %v87_v22, %v85_v16  ;;  %v94_v31 = vadd.f32 %v93_v23, %v86_v17  ;;  %v40_v32 = vadd.f32 %v39_v24, %v37_v18  ;;  %v46_v33 = vadd.f32 %v45_v25, %v38_v19 }
  0x9a   :  { %v109_v34 = vmul.f32 %v107_v28, %v100_v20  ;;  %v110_v35 = vmul.f32 %v107_v28, %v101_v21  ;;  %v61_v36 = vmul.f32 %v59_v29, %v52_v26  ;;  %v62_v37 = vmul.f32 %v59_v29, %v53_v27  ;;  %v196_v20 = vld [vmem:[#allocation2 + $0x70] sm:$0xff]  ;;  %v197_v21 = vld [vmem:[#allocation2 + $0x78] sm:$0xff] }
  0x9b   :  { %v89_v38 = vrot.slane %v88_v30, 2  ;;  %v95_v39 = vrot.slane %v94_v31, 2  ;;  %v41_v40 = vrot.slane %v40_v32, 2  ;;  %v47_v41 = vrot.slane %v46_v33, 2 }
  0x9c   :  { %v111_v42 = vrot.slane %v109_v34, 4  ;;  %v117_v43 = vrot.slane %v110_v35, 4  ;;  %v63_v44 = vrot.slane %v61_v36, 4  ;;  %v69_v45 = vrot.slane %v62_v37, 4  ;;  %v155_v58 = vpop.permute.xlu1 %154  ;;  %v131_v1 = vpop.permute.xlu0 %130 }
  0x9d   :  { %v90_v46 = vadd.f32 %v89_v38, %v88_v30  ;;  %v96_v47 = vadd.f32 %v95_v39, %v94_v31  ;;  %v42_v48 = vadd.f32 %v41_v40, %v40_v32  ;;  %v48_v49 = vadd.f32 %v47_v41, %v46_v33  ;;  %v172_v31 = vld [vmem:[#allocation2 + $0x60] sm:$0xff]  ;;  %v173_v32 = vld [vmem:[#allocation2 + $0x68] sm:$0xff] }
  0x9e   :  { %v112_v50 = vadd.f32 %v111_v42, %v109_v34  ;;  %v118_v51 = vadd.f32 %v117_v43, %v110_v35  ;;  %v64_v52 = vadd.f32 %v63_v44, %v61_v36  ;;  %v70_v53 = vadd.f32 %v69_v45, %v62_v37 }
  0x9f   :  { %v91_v54 = vrot.slane %v90_v46, 1  ;;  %v97_v55 = vrot.slane %v96_v47, 1  ;;  %v43_v2 = vrot.slane %v42_v48, 1  ;;  %v49_v3 = vrot.slane %v48_v49, 1 }
  0xa0   :  { %v113_v59 = vrot.slane %v112_v50, 2  ;;  %v119_v60 = vrot.slane %v118_v51, 2  ;;  %v65_v61 = vrot.slane %v64_v52, 2  ;;  %v71_v62 = vrot.slane %v70_v53, 2  ;;  %v203_v22 = vpop.permute.xlu1 %202  ;;  %v179_v33 = vpop.permute.xlu0 %178 }
  0xa1   :  { %v157_v8 = vmul.f32 %v155_v58, %v148_v56  ;;  %v158_v9 = vmul.f32 %v155_v58, %v149_v57  ;;  %v133_v10 = vmul.f32 %v131_v1, %v124_v63  ;;  %v134_v11 = vmul.f32 %v131_v1, %v125_v0 }
  0xa2   :  { %v114_v4 = vadd.f32 %v113_v59, %v112_v50  ;;  %v120_v5 = vadd.f32 %v119_v60, %v118_v51  ;;  %v66_v6 = vadd.f32 %v65_v61, %v64_v52  ;;  %v72_v7 = vadd.f32 %v71_v62, %v70_v53 }
  0xa3   :  { %v413_v12 = vadd.f32 %v91_v54, %v90_v46  ;;  %v415_v13 = vadd.f32 %v97_v55, %v96_v47  ;;  %v159_v16 = vrot.slane %v157_v8, 4  ;;  %v165_v17 = vrot.slane %v158_v9, 4 }
  0xa4   :  { %v67_v14 = vrot.slane %v66_v6, 1  ;;  %v73_v15 = vrot.slane %v72_v7, 1  ;;  %v135_v18 = vrot.slane %v133_v10, 4  ;;  %v141_v19 = vrot.slane %v134_v11, 4 }
  0xa5   :  { %v44_v23 = vadd.f32 %v43_v2, %v42_v48  ;;  %v50_v24 = vadd.f32 %v49_v3, %v48_v49  ;;  %v115_v25 = vrot.slane %v114_v4, 1  ;;  %v121_v26 = vrot.slane %v120_v5, 1 }
  0xa6   :  { %v160_v27 = vadd.f32 %v159_v16, %v157_v8  ;;  %v166_v28 = vadd.f32 %v165_v17, %v158_v9  ;;  %v136_v29 = vadd.f32 %v135_v18, %v133_v10  ;;  %v142_v30 = vadd.f32 %v141_v19, %v134_v11 }
  0xa7   :  { %v68_v34 = vadd.f32 %v67_v14, %v66_v6  ;;  %v74_v35 = vadd.f32 %v73_v15, %v72_v7  ;;  %v205_v36 = vmul.f32 %v203_v22, %v196_v20  ;;  %v206_v37 = vmul.f32 %v203_v22, %v197_v21 }
  0xa8   :  { %v161_v38 = vrot.slane %v160_v27, 2  ;;  %v167_v39 = vrot.slane %v166_v28, 2  ;;  %v137_v40 = vrot.slane %v136_v29, 2  ;;  %v143_v41 = vrot.slane %v142_v30, 2 }
  0xa9   :  { %v207_v42 = vrot.slane %v205_v36, 4  ;;  %v213_v43 = vrot.slane %v206_v37, 4  ;;  %v181_v44 = vmul.f32 %v179_v33, %v172_v31  ;;  %v182_v45 = vmul.f32 %v179_v33, %v173_v32 }
  0xaa   :  { %v162_v46 = vadd.f32 %v161_v38, %v160_v27  ;;  %v168_v47 = vadd.f32 %v167_v39, %v166_v28  ;;  %v138_v48 = vadd.f32 %v137_v40, %v136_v29  ;;  %v144_v49 = vadd.f32 %v143_v41, %v142_v30  ;;  %v244_v30 = vpop.permute.xlu0 %243 }
  0xab   :  { %v208_v50 = vadd.f32 %v207_v42, %v205_v36  ;;  %v214_v51 = vadd.f32 %v213_v43, %v206_v37  ;;  %v183_v52 = vrot.slane %v181_v44, 4  ;;  %v189_v53 = vrot.slane %v182_v45, 4 }
  0xac   :  { %v220_v54 = vsel %vm219_vm0, %v44_v23, %v68_v34  ;;  %v221_v55 = vsel %vm219_vm0, %v50_v24, %v74_v35  ;;  %v139_v56 = vrot.slane %v138_v48, 1  ;;  %v145_v57 = vrot.slane %v144_v49, 1 }
  0xad   :  { %v209_v58 = vrot.slane %v208_v50, 2  ;;  %v215_v59 = vrot.slane %v214_v51, 2  ;;  %v184_v60 = vadd.f32 %v183_v52, %v181_v44  ;;  %v190_v61 = vadd.f32 %v189_v53, %v182_v45 }
  0xae   :  { %v116_v62 = vadd.f32 %v115_v25, %v114_v4  ;;  %v122_v63 = vadd.f32 %v121_v26, %v120_v5  ;;  %v163_v0 = vrot.slane %v162_v46, 1  ;;  %v169_v1 = vrot.slane %v168_v47, 1 }
  0xaf   :  { %v210_v2 = vadd.f32 %v209_v58, %v208_v50  ;;  %v216_v3 = vadd.f32 %v215_v59, %v214_v51  ;;  %v185_v6 = vrot.slane %v184_v60, 2  ;;  %v191_v7 = vrot.slane %v190_v61, 2 }
  0xb0   :  { %v140_v8 = vadd.f32 %v139_v56, %v138_v48  ;;  %v146_v9 = vadd.f32 %v145_v57, %v144_v49  ;;  %v223_v10 = vsel %vm222_vm1, %v220_v54, %v413_v12  ;;  %v224_v11 = vsel %vm222_vm1, %v221_v55, %v415_v13 }
  0xb1   :  { %v211_v14 = vrot.slane %v210_v2, 1  ;;  %v217_v15 = vrot.slane %v216_v3, 1  ;;  %v186_v16 = vadd.f32 %v185_v6, %v184_v60  ;;  %v192_v17 = vadd.f32 %v191_v7, %v190_v61 }
  0xb2   :  { %v164_v4 = vadd.f32 %v163_v0, %v162_v46  ;;  %v170_v5 = vadd.f32 %v169_v1, %v168_v47  ;;  %v226_v18 = vsel %vm225_vm2, %v223_v10, %v116_v62  ;;  %v227_v19 = vsel %vm225_vm2, %v224_v11, %v122_v63 }
  0xb3   :  { %v187_v20 = vrot.slane %v186_v16, 1  ;;  %v193_v21 = vrot.slane %v192_v17, 1  ;;  %v212_v22 = vadd.f32 %v211_v14, %v210_v2  ;;  %v218_v23 = vadd.f32 %v217_v15, %v216_v3 }
  0xb4   :  { %v229_v12 = vsel %vm228_vm3, %v226_v18, %v140_v8  ;;  %v230_v13 = vsel %vm228_vm3, %v227_v19, %v146_v9 }
  0xb5   :  { %v188_v24 = vadd.f32 %v187_v20, %v186_v16  ;;  %v194_v25 = vadd.f32 %v193_v21, %v192_v17  ;;  %v232_v26 = vsel %vm231_vm4, %v229_v12, %v164_v4  ;;  %v233_v27 = vsel %vm231_vm4, %v230_v13, %v170_v5 }
  0xb7   :  { %v235_v28 = vsel %vm234_vm5, %v232_v26, %v188_v24  ;;  %v236_v29 = vsel %vm234_vm5, %v233_v27, %v194_v25 }
  0xb8   :  { %v238_v31 = vsel %vm237_vm6, %v235_v28, %v212_v22  ;;  %v239_v32 = vsel %vm237_vm6, %v236_v29, %v218_v23 }
  0xb9   :  { %v246_v33 = vadd.f32 %v244_v30, %v238_v31  ;;  %v247_v34 = vadd.f32 %v244_v30, %v239_v32 }
  0xbb   :  { %v284_v35 = vmul.f32 -1.442695, %v246_v33  ;;  %v285_v36 = vmul.f32 -1.442695, %v247_v34 }
  0xbd   :  { %293 = vpow2.f32 %v284_v35 }
  0xbe   :  { %295 = vpow2.f32 %v285_v36 }
  0xc7   :  { %v294_v37 = vpop.eup %293 }
  0xc8   :  { %v296_v38 = vpop.eup %295  ;;  %v254_v39 = vadd.f32 1.0, %v294_v37 }
  0xc9   :  { %v255_v40 = vadd.f32 1.0, %v296_v38 }
  0xca   :  { %297 = vrcp.f32 %v254_v39 }
  0xcb   :  { %299 = vrcp.f32 %v255_v40 }
  0xd4   :  { %v298_v41 = vpop.eup %297 }
  0xd5   :  { %v300_v42 = vpop.eup %299  ;;  %260 = vst [vmem:[#allocation5] sm:$0xff] %v298_v41 }
  0xd6   :  { %261 = vst [vmem:[#allocation5 + $0x8] sm:$0xff] %v300_v42 }
  0xd7   :  { %334 = shalt.err (!%p331_p12)
}
  0xd8   :  { %s335_s19 = scalar_lea.hbm %s442_s3, 256 }
  0xd9   :  { %p336_p13 = scmp.ne.s32.totalorder %s442_s3, %s335_s19  ;;  %p339_p0 = scmp.lt.u32.totalorder %s335_s19, %s442_s3 }
  0xdb   :  { %p341_p1 = pnand %p339_p0, %p336_p13 }
  0xdd   :  { %344 = shalt.err (!%p341_p1)
}
  0xde   :  { %271 = dma.vmem_to_hbm [thread:$0]  %s269_s2, 256, %s442_s3, [#allocation4]  }
  0xdf   :  { %347 = dma.done.wait [#allocation4], 256  }
  0xe0   :  { %348 = vsyncadd [#allocation4], 4294967040 }
  0xe1   :  { %275 = vsyncpa [#allocation3], 1 }
  0xe2   :  { %276 = vsyncpa [#allocation4], 1 }

</bundles_post_ra>
